<compile_context>
chip_gen: v7x
topology: tpu7x:2x2x1
jax: 0.10.0
libtpu: 0.0.40
codegen_flags: <defaults>
</compile_context>

<pallas_src>
import math
import functools

import jax
import jax.numpy as jnp
from jax import lax
from jax.experimental import pallas as pl
from jax.experimental.pallas import tpu as pltpu


def _make_kernel(NB, K, pad, T2, T3, T4):
    """Builds the per-batch-block kernel (all sizes are Python constants)."""

    def conv_block(x3, t_out, w_flat, b, relu):
        # x3: (NB, T_in, Cin).  "Same" Conv1d as one im2col matmul for the
        # whole block: (NB*t_out, K*Cin) @ (K*Cin, H).
        nb, _, cin = x3.shape
        z = jnp.zeros((nb, pad, cin), x3.dtype)
        xp = jnp.concatenate([z, x3, z], axis=1)              # (NB, T_in+2p, Cin)
        cols = jnp.concatenate(
            [xp[:, k:k + t_out, :] for k in range(K)], axis=2)  # (NB, t_out, K*Cin)
        y = jnp.dot(cols.reshape(nb * t_out, K * cin), w_flat,
                    preferred_element_type=jnp.float32) + b
        if relu:
            y = jnp.maximum(y, 0.0)
        return y.reshape(nb, t_out, w_flat.shape[1])          # (NB, t_out, H)

    def kernel(x_ref, mask_ref,
               w1_ref, b1_ref, w2_ref, b2_ref, w3_ref, b3_ref,
               wa_ref, ba_ref, wo1_ref, bo1_ref, wo2_ref, bo2_ref,
               out_ref):
        # x_ref   : (NB, T1, C)   avg-pooled input
        # mask_ref: (NB, T4)      attention mask logits (lane-dense)
        # out_ref : (NB, NCLS)
        x = x_ref[...]

        # ---- three Conv1d layers, each one im2col matmul over the block ----
        h = conv_block(x, T2, w1_ref[...], b1_ref[...], relu=True)
        h = conv_block(h, T3, w2_ref[...], b2_ref[...], relu=True)
        h = conv_block(h, T4, w3_ref[...], b3_ref[...], relu=False)   # (NB,T4,H)

        # ---- SelfAttentionPooling, batched over the whole block ------------
        # logits = h @ W + b  computed as a VPU multiply + lane reduce against
        # the (1, H) weight row (avoids a (H, 1) matmul with lane width 1).
        logits = (jnp.sum(h * wa_ref[...], axis=-1)           # (NB, T4)
                  + ba_ref[...] + mask_ref[...])
        m = jnp.max(logits, axis=-1, keepdims=True)
        e = jnp.exp(logits - m)
        att = e / jnp.sum(e, axis=-1, keepdims=True)          # (NB, T4)
        utter = jnp.sum(h * att[..., None], axis=1)           # (NB, H)

        # ---- output MLP, batched over the utterance block -------------------
        o1 = jnp.maximum(jnp.dot(utter, wo1_ref[...],
                                 preferred_element_type=jnp.float32)
                         + bo1_ref[...], 0.0)                 # (NB, H)
        pred = (jnp.dot(o1, wo2_ref[...],
                        preferred_element_type=jnp.float32)
                + bo2_ref[...])                               # (NB, NCLS)
        out_ref[...] = pred                                   # single store

    return kernel


def cnn_self_attention_forward(features, att_mask, params, *,
                               kernel_size, padding, pooling, batch_block=8):
    """features: (N, T, C) float32, att_mask: (N, T_out) float32 (logit offsets)."""
    N, T_in, C = features.shape
    K, pad, stride = kernel_size, padding, pooling
    H = params["w1"].shape[2]
    NCLS = params["wo2"].shape[1]

    # AvgPool1d(kernel_size, stride=pooling, padding), count_include_pad=True,
    # as a single fused reduce_window.
    pooled = lax.reduce_window(
        features, 0.0, lax.add,
        window_dimensions=(1, K, 1), window_strides=(1, stride, 1),
        padding=((0, 0), (pad, pad), (0, 0))) * (1.0 / K)     # (N, T1, C)
    T1 = pooled.shape[1]

    # conv output lengths ("same" convs: T stays constant for pad=(K-1)//2)
    T2 = T1 + 2 * pad - K + 1
    T3 = T2 + 2 * pad - K + 1
    T4 = T3 + 2 * pad - K + 1
    assert att_mask.shape == (N, T4), (att_mask.shape, (N, T4))

    NB = min(N, batch_block)
    assert N % NB == 0, "wrapper assumes batch divides the batch block"
    mask2d = att_mask.astype(jnp.float32)                     # (N, T4)

    # Pre-flatten conv taps: (K, Cin, Cout) -> (K*Cin, Cout) so each conv is a
    # single im2col matmul inside the kernel.  Attention weight as a (1, H) row.
    w1f = params["w1"].reshape(K * C, H)
    w2f = params["w2"].reshape(K * H, H)
    w3f = params["w3"].reshape(K * H, H)
    wa_row = params["wa"].T                                   # (1, H)

    kernel = _make_kernel(NB, K, pad, T2, T3, T4)

    grid_spec = pltpu.PrefetchScalarGridSpec(
        num_scalar_prefetch=0,
        grid=(N // NB,),
        in_specs=[
            pl.BlockSpec((NB, T1, C), lambda b: (b, 0, 0)),
            pl.BlockSpec((NB, T4), lambda b: (b, 0)),
            pl.BlockSpec((K * C, H), lambda b: (0, 0)),
            pl.BlockSpec((1, H), lambda b: (0, 0)),
            pl.BlockSpec((K * H, H), lambda b: (0, 0)),
            pl.BlockSpec((1, H), lambda b: (0, 0)),
            pl.BlockSpec((K * H, H), lambda b: (0, 0)),
            pl.BlockSpec((1, H), lambda b: (0, 0)),
            pl.BlockSpec((1, H), lambda b: (0, 0)),
            pl.BlockSpec((1, 1), lambda b: (0, 0)),
            pl.BlockSpec((H, H), lambda b: (0, 0)),
            pl.BlockSpec((1, H), lambda b: (0, 0)),
            pl.BlockSpec((H, NCLS), lambda b: (0, 0)),
            pl.BlockSpec((1, NCLS), lambda b: (0, 0)),
        ],
        out_specs=pl.BlockSpec((NB, NCLS), lambda b: (b, 0)),
        scratch_shapes=[],
    )

    out = pl.pallas_call(
        kernel,
        out_shape=jax.ShapeDtypeStruct((N, NCLS), jnp.float32),
        grid_spec=grid_spec,
        compiler_params=pltpu.CompilerParams(
            dimension_semantics=("parallel",)),
    )(pooled, mask2d,
      w1f, params["b1"], w2f, params["b2"], w3f, params["b3"],
      wa_row, params["ba"],
      params["wo1"], params["bo1"], params["wo2"], params["bo2"])
    return out                                                # (N, NCLS)


# ----------------------------- pure-JAX reference ----------------------------
def reference_forward(features, att_mask, p, *, kernel_size, padding, pooling):
    K, pad, stride = kernel_size, padding, pooling
    x = jnp.transpose(features, (0, 2, 1))                    # (N, C, T)
    xp = jnp.pad(x, ((0, 0), (0, 0), (pad, pad)))
    T1 = (x.shape[2] + 2 * pad - K) // stride + 1
    pooled = jnp.stack(
        [xp[:, :, i * stride:i * stride + K].mean(axis=2) for i in range(T1)],
        axis=2)

    def conv1d(z, w_kio, b):
        w = jnp.transpose(w_kio, (2, 1, 0))                   # (O, I, K)
        y = jax.lax.conv_general_dilated(
            z, w, window_strides=(1,), padding=[(pad, pad)],
            dimension_numbers=("NCH", "OIH", "NCH"))
        return y + b.reshape(1, -1, 1)

    h = jax.nn.relu(conv1d(pooled, p["w1"], p["b1"]))
    h = jax.nn.relu(conv1d(h, p["w2"], p["b2"]))
    h = conv1d(h, p["w3"], p["b3"])
    rep = jnp.transpose(h, (0, 2, 1))                         # (N, T4, H)
    logits = (rep @ p["wa"])[..., 0] + p["ba"][0, 0] + att_mask
    att = jax.nn.softmax(logits, axis=-1)[..., None]
    utter = jnp.sum(rep * att, axis=1)
    o = jax.nn.relu(utter @ p["wo1"] + p["bo1"][0])
    return o @ p["wo2"] + p["bo2"][0]


# --------------------------------- main ---------------------------------------
if __name__ == "__main__":
    # module hyper-parameters
    INPUT_DIM, HIDDEN_DIM, KERNEL, PAD, POOL, NCLS = 8, 32, 5, 2, 2, 4
    N, T_IN = 2, 16

    key = jax.random.PRNGKey(0)
    ks = jax.random.split(key, 16)

    def u(k, shape, fan_in):
        s = 1.0 / math.sqrt(fan_in)
        return jax.random.uniform(k, shape, jnp.float32, -s, s)

    params = {
        # Conv1d weights stored as (K, Cin, Cout); biases as (1, Cout)
        "w1": u(ks[0], (KERNEL, INPUT_DIM, HIDDEN_DIM), INPUT_DIM * KERNEL),
        "b1": u(ks[1], (1, HIDDEN_DIM), INPUT_DIM * KERNEL),
        "w2": u(ks[2], (KERNEL, HIDDEN_DIM, HIDDEN_DIM), HIDDEN_DIM * KERNEL),
        "b2": u(ks[3], (1, HIDDEN_DIM), HIDDEN_DIM * KERNEL),
        "w3": u(ks[4], (KERNEL, HIDDEN_DIM, HIDDEN_DIM), HIDDEN_DIM * KERNEL),
        "b3": u(ks[5], (1, HIDDEN_DIM), HIDDEN_DIM * KERNEL),
        # SelfAttentionPooling W: Linear(H, 1) -> (H, 1) weight, (1, 1) bias
        "wa": u(ks[6], (HIDDEN_DIM, 1), HIDDEN_DIM),
        "ba": u(ks[7], (1, 1), HIDDEN_DIM),
        # out_layer: Linear(H, H) -> ReLU -> Linear(H, NCLS)
        "wo1": u(ks[8], (HIDDEN_DIM, HIDDEN_DIM), HIDDEN_DIM),
        "bo1": u(ks[9], (1, HIDDEN_DIM), HIDDEN_DIM),
        "wo2": u(ks[10], (HIDDEN_DIM, NCLS), HIDDEN_DIM),
        "bo2": u(ks[11], (1, NCLS), HIDDEN_DIM),
    }

    features = jax.random.normal(ks[12], (N, T_IN, INPUT_DIM), jnp.float32)

    # sequence length after AvgPool1d + three same-length convs
    T1 = (T_IN + 2 * PAD - KERNEL) // POOL + 1
    T_OUT = T1  # kernel=5, pad=2 -> convs preserve length
    att_mask = jax.random.normal(ks[13], (N, T_OUT), jnp.float32) * 0.1

    fwd = functools.partial(cnn_self_attention_forward,
                            kernel_size=KERNEL, padding=PAD, pooling=POOL)
    out = jax.block_until_ready(fwd(features, att_mask, params))

    ref = reference_forward(features, att_mask, params,
                            kernel_size=KERNEL, padding=PAD, pooling=POOL)
    assert out.shape == (N, NCLS)
    assert jnp.allclose(out, ref, rtol=1e-4, atol=1e-4), (out, ref)
    print("KERNEL_OK")
</pallas_src>

<mosaic_0001>
module attributes {stable_mosaic.version = 11 : i64} {
  func.func @kernel(%arg0: i32, %arg1: memref<2x8x8xf32, #tpu.memory_space<vmem>>, %arg2: memref<2x8xf32, #tpu.memory_space<vmem>>, %arg3: memref<40x32xf32, #tpu.memory_space<vmem>>, %arg4: memref<1x32xf32, #tpu.memory_space<vmem>>, %arg5: memref<160x32xf32, #tpu.memory_space<vmem>>, %arg6: memref<1x32xf32, #tpu.memory_space<vmem>>, %arg7: memref<160x32xf32, #tpu.memory_space<vmem>>, %arg8: memref<1x32xf32, #tpu.memory_space<vmem>>, %arg9: memref<1x32xf32, #tpu.memory_space<vmem>>, %arg10: memref<1x1xf32, #tpu.memory_space<vmem>>, %arg11: memref<32x32xf32, #tpu.memory_space<vmem>>, %arg12: memref<1x32xf32, #tpu.memory_space<vmem>>, %arg13: memref<32x4xf32, #tpu.memory_space<vmem>>, %arg14: memref<1x4xf32, #tpu.memory_space<vmem>>, %arg15: memref<2x4xf32, #tpu.memory_space<vmem>>) attributes {dimension_semantics = [#tpu.dimension_semantics<parallel>], iteration_bounds = array<i64: 1>, scalar_prefetch = 0 : i64, scratch_operands = 0 : i64, tpu.core_type = #tpu.core_type<tc>, window_params = [{transform_indices = @transform_0, window_bounds = array<i64: 2, 8, 8>}, {transform_indices = @transform_1, window_bounds = array<i64: 2, 8>}, {pipeline_mode = #tpu.pipeline_mode<synchronous>, transform_indices = @transform_2, window_bounds = array<i64: 40, 32>}, {pipeline_mode = #tpu.pipeline_mode<synchronous>, transform_indices = @transform_3, window_bounds = array<i64: 1, 32>}, {pipeline_mode = #tpu.pipeline_mode<synchronous>, transform_indices = @transform_4, window_bounds = array<i64: 160, 32>}, {pipeline_mode = #tpu.pipeline_mode<synchronous>, transform_indices = @transform_5, window_bounds = array<i64: 1, 32>}, {pipeline_mode = #tpu.pipeline_mode<synchronous>, transform_indices = @transform_6, window_bounds = array<i64: 160, 32>}, {pipeline_mode = #tpu.pipeline_mode<synchronous>, transform_indices = @transform_7, window_bounds = array<i64: 1, 32>}, {pipeline_mode = #tpu.pipeline_mode<synchronous>, transform_indices = @transform_8, window_bounds = array<i64: 1, 32>}, {pipeline_mode = #tpu.pipeline_mode<synchronous>, transform_indices = @transform_9, window_bounds = array<i64: 1, 1>}, {pipeline_mode = #tpu.pipeline_mode<synchronous>, transform_indices = @transform_10, window_bounds = array<i64: 32, 32>}, {pipeline_mode = #tpu.pipeline_mode<synchronous>, transform_indices = @transform_11, window_bounds = array<i64: 1, 32>}, {pipeline_mode = #tpu.pipeline_mode<synchronous>, transform_indices = @transform_12, window_bounds = array<i64: 32, 4>}, {pipeline_mode = #tpu.pipeline_mode<synchronous>, transform_indices = @transform_13, window_bounds = array<i64: 1, 4>}, {transform_indices = @transform_14, window_bounds = array<i64: 2, 4>}]} {
    %c0 = arith.constant 0 : index
    %c0_0 = arith.constant 0 : index
    %c0_1 = arith.constant 0 : index
    %0 = vector.load %arg1[%c0, %c0_0, %c0_1] : memref<2x8x8xf32, #tpu.memory_space<vmem>>, vector<2x8x8xf32>
    %c0_2 = arith.constant 0 : index
    %c0_3 = arith.constant 0 : index
    %1 = vector.load %arg3[%c0_2, %c0_3] : memref<40x32xf32, #tpu.memory_space<vmem>>, vector<40x32xf32>
    %c0_4 = arith.constant 0 : index
    %c0_5 = arith.constant 0 : index
    %2 = vector.load %arg4[%c0_4, %c0_5] : memref<1x32xf32, #tpu.memory_space<vmem>>, vector<1x32xf32>
    %cst = arith.constant 0.000000e+00 : f32
    %3 = vector.broadcast %cst : f32 to vector<2x2x8xf32>
    %4 = tpu.concatenate %3, %0, %3 in 1 : vector<2x2x8xf32>, vector<2x8x8xf32>, vector<2x2x8xf32> -> vector<2x12x8xf32>
    %5 = vector.extract_strided_slice %4 {offsets = [0, 0, 0], sizes = [2, 8, 8], strides = [1, 1, 1]} : vector<2x12x8xf32> to vector<2x8x8xf32>
    %6 = vector.extract_strided_slice %4 {offsets = [0, 1, 0], sizes = [2, 8, 8], strides = [1, 1, 1]} : vector<2x12x8xf32> to vector<2x8x8xf32>
    %7 = vector.extract_strided_slice %4 {offsets = [0, 2, 0], sizes = [2, 8, 8], strides = [1, 1, 1]} : vector<2x12x8xf32> to vector<2x8x8xf32>
    %8 = vector.extract_strided_slice %4 {offsets = [0, 3, 0], sizes = [2, 8, 8], strides = [1, 1, 1]} : vector<2x12x8xf32> to vector<2x8x8xf32>
    %9 = vector.extract_strided_slice %4 {offsets = [0, 4, 0], sizes = [2, 8, 8], strides = [1, 1, 1]} : vector<2x12x8xf32> to vector<2x8x8xf32>
    %10 = tpu.concatenate %5, %6, %7, %8, %9 in 2 : vector<2x8x8xf32>, vector<2x8x8xf32>, vector<2x8x8xf32>, vector<2x8x8xf32>, vector<2x8x8xf32> -> vector<2x8x40xf32>
    %11 = vector.shape_cast %10 : vector<2x8x40xf32> to vector<16x40xf32>
    %cst_6 = arith.constant dense<0.000000e+00> : vector<16x32xf32>
    %12 = tpu.matmul %11, %1, %cst_6 {dimension_numbers = #tpu.dot_dimension_numbers<[1], [0], [0], [1], [0, 0, 1, 1], [], []>} : vector<16x40xf32>, vector<40x32xf32>, vector<16x32xf32> -> vector<16x32xf32>
    %13 = vector.broadcast %2 : vector<1x32xf32> to vector<16x32xf32>
    %14 = arith.addf %12, %13 : vector<16x32xf32>
    %cst_7 = arith.constant 0.000000e+00 : f32
    %15 = vector.broadcast %cst_7 : f32 to vector<16x32xf32>
    %16 = arith.maximumf %14, %15 : vector<16x32xf32>
    %17 = vector.shape_cast %16 : vector<16x32xf32> to vector<2x8x32xf32>
    %c0_8 = arith.constant 0 : index
    %c0_9 = arith.constant 0 : index
    %18 = vector.load %arg5[%c0_8, %c0_9] : memref<160x32xf32, #tpu.memory_space<vmem>>, vector<160x32xf32>
    %c0_10 = arith.constant 0 : index
    %c0_11 = arith.constant 0 : index
    %19 = vector.load %arg6[%c0_10, %c0_11] : memref<1x32xf32, #tpu.memory_space<vmem>>, vector<1x32xf32>
    %cst_12 = arith.constant 0.000000e+00 : f32
    %20 = vector.broadcast %cst_12 : f32 to vector<2x2x32xf32>
    %21 = tpu.concatenate %20, %17, %20 in 1 : vector<2x2x32xf32>, vector<2x8x32xf32>, vector<2x2x32xf32> -> vector<2x12x32xf32>
    %22 = vector.extract_strided_slice %21 {offsets = [0, 0, 0], sizes = [2, 8, 32], strides = [1, 1, 1]} : vector<2x12x32xf32> to vector<2x8x32xf32>
    %23 = vector.extract_strided_slice %21 {offsets = [0, 1, 0], sizes = [2, 8, 32], strides = [1, 1, 1]} : vector<2x12x32xf32> to vector<2x8x32xf32>
    %24 = vector.extract_strided_slice %21 {offsets = [0, 2, 0], sizes = [2, 8, 32], strides = [1, 1, 1]} : vector<2x12x32xf32> to vector<2x8x32xf32>
    %25 = vector.extract_strided_slice %21 {offsets = [0, 3, 0], sizes = [2, 8, 32], strides = [1, 1, 1]} : vector<2x12x32xf32> to vector<2x8x32xf32>
    %26 = vector.extract_strided_slice %21 {offsets = [0, 4, 0], sizes = [2, 8, 32], strides = [1, 1, 1]} : vector<2x12x32xf32> to vector<2x8x32xf32>
    %27 = tpu.concatenate %22, %23, %24, %25, %26 in 2 : vector<2x8x32xf32>, vector<2x8x32xf32>, vector<2x8x32xf32>, vector<2x8x32xf32>, vector<2x8x32xf32> -> vector<2x8x160xf32>
    %28 = vector.shape_cast %27 : vector<2x8x160xf32> to vector<16x160xf32>
    %cst_13 = arith.constant dense<0.000000e+00> : vector<16x32xf32>
    %29 = tpu.matmul %28, %18, %cst_13 {dimension_numbers = #tpu.dot_dimension_numbers<[1], [0], [0], [1], [0, 0, 1, 1], [], []>} : vector<16x160xf32>, vector<160x32xf32>, vector<16x32xf32> -> vector<16x32xf32>
    %30 = vector.broadcast %19 : vector<1x32xf32> to vector<16x32xf32>
    %31 = arith.addf %29, %30 : vector<16x32xf32>
    %cst_14 = arith.constant 0.000000e+00 : f32
    %32 = vector.broadcast %cst_14 : f32 to vector<16x32xf32>
    %33 = arith.maximumf %31, %32 : vector<16x32xf32>
    %34 = vector.shape_cast %33 : vector<16x32xf32> to vector<2x8x32xf32>
    %c0_15 = arith.constant 0 : index
    %c0_16 = arith.constant 0 : index
    %35 = vector.load %arg7[%c0_15, %c0_16] : memref<160x32xf32, #tpu.memory_space<vmem>>, vector<160x32xf32>
    %c0_17 = arith.constant 0 : index
    %c0_18 = arith.constant 0 : index
    %36 = vector.load %arg8[%c0_17, %c0_18] : memref<1x32xf32, #tpu.memory_space<vmem>>, vector<1x32xf32>
    %cst_19 = arith.constant 0.000000e+00 : f32
    %37 = vector.broadcast %cst_19 : f32 to vector<2x2x32xf32>
    %38 = tpu.concatenate %37, %34, %37 in 1 : vector<2x2x32xf32>, vector<2x8x32xf32>, vector<2x2x32xf32> -> vector<2x12x32xf32>
    %39 = vector.extract_strided_slice %38 {offsets = [0, 0, 0], sizes = [2, 8, 32], strides = [1, 1, 1]} : vector<2x12x32xf32> to vector<2x8x32xf32>
    %40 = vector.extract_strided_slice %38 {offsets = [0, 1, 0], sizes = [2, 8, 32], strides = [1, 1, 1]} : vector<2x12x32xf32> to vector<2x8x32xf32>
    %41 = vector.extract_strided_slice %38 {offsets = [0, 2, 0], sizes = [2, 8, 32], strides = [1, 1, 1]} : vector<2x12x32xf32> to vector<2x8x32xf32>
    %42 = vector.extract_strided_slice %38 {offsets = [0, 3, 0], sizes = [2, 8, 32], strides = [1, 1, 1]} : vector<2x12x32xf32> to vector<2x8x32xf32>
    %43 = vector.extract_strided_slice %38 {offsets = [0, 4, 0], sizes = [2, 8, 32], strides = [1, 1, 1]} : vector<2x12x32xf32> to vector<2x8x32xf32>
    %44 = tpu.concatenate %39, %40, %41, %42, %43 in 2 : vector<2x8x32xf32>, vector<2x8x32xf32>, vector<2x8x32xf32>, vector<2x8x32xf32>, vector<2x8x32xf32> -> vector<2x8x160xf32>
    %45 = vector.shape_cast %44 : vector<2x8x160xf32> to vector<16x160xf32>
    %cst_20 = arith.constant dense<0.000000e+00> : vector<16x32xf32>
    %46 = tpu.matmul %45, %35, %cst_20 {dimension_numbers = #tpu.dot_dimension_numbers<[1], [0], [0], [1], [0, 0, 1, 1], [], []>} : vector<16x160xf32>, vector<160x32xf32>, vector<16x32xf32> -> vector<16x32xf32>
    %47 = vector.broadcast %36 : vector<1x32xf32> to vector<16x32xf32>
    %48 = arith.addf %46, %47 : vector<16x32xf32>
    %49 = vector.shape_cast %48 : vector<16x32xf32> to vector<2x8x32xf32>
    %c0_21 = arith.constant 0 : index
    %c0_22 = arith.constant 0 : index
    %50 = vector.load %arg9[%c0_21, %c0_22] : memref<1x32xf32, #tpu.memory_space<vmem>>, vector<1x32xf32>
    %51 = vector.shape_cast %50 : vector<1x32xf32> to vector<1x1x32xf32>
    %52 = vector.broadcast %51 : vector<1x1x32xf32> to vector<2x8x32xf32>
    %53 = arith.mulf %49, %52 : vector<2x8x32xf32>
    %cst_23 = arith.constant dense<0.000000e+00> : vector<2x8xf32>
    %54 = vector.multi_reduction <add>, %53, %cst_23 [2] : vector<2x8x32xf32> to vector<2x8xf32>
    %c0_24 = arith.constant 0 : index
    %c0_25 = arith.constant 0 : index
    %55 = vector.load %arg10[%c0_24, %c0_25] : memref<1x1xf32, #tpu.memory_space<vmem>>, vector<1x1xf32>
    %56 = vector.broadcast %55 : vector<1x1xf32> to vector<2x8xf32>
    %57 = arith.addf %54, %56 : vector<2x8xf32>
    %c0_26 = arith.constant 0 : index
    %c0_27 = arith.constant 0 : index
    %58 = vector.load %arg2[%c0_26, %c0_27] : memref<2x8xf32, #tpu.memory_space<vmem>>, vector<2x8xf32>
    %59 = arith.addf %57, %58 : vector<2x8xf32>
    %cst_28 = arith.constant dense<0xFF800000> : vector<2xf32>
    %60 = vector.multi_reduction <maximumf>, %59, %cst_28 [1] : vector<2x8xf32> to vector<2xf32>
    %61 = vector.shape_cast %60 : vector<2xf32> to vector<2x1xf32>
    %62 = vector.broadcast %61 : vector<2x1xf32> to vector<2x8xf32>
    %63 = arith.subf %59, %62 : vector<2x8xf32>
    %64 = math.exp %63 : vector<2x8xf32>
    %cst_29 = arith.constant dense<0.000000e+00> : vector<2xf32>
    %65 = vector.multi_reduction <add>, %64, %cst_29 [1] : vector<2x8xf32> to vector<2xf32>
    %66 = vector.shape_cast %65 : vector<2xf32> to vector<2x1xf32>
    %67 = vector.broadcast %66 : vector<2x1xf32> to vector<2x8xf32>
    %68 = arith.divf %64, %67 : vector<2x8xf32>
    %69 = vector.shape_cast %68 : vector<2x8xf32> to vector<2x8x1xf32>
    %70 = vector.broadcast %69 : vector<2x8x1xf32> to vector<2x8x32xf32>
    %71 = arith.mulf %49, %70 : vector<2x8x32xf32>
    %cst_30 = arith.constant dense<0.000000e+00> : vector<2x32xf32>
    %72 = vector.multi_reduction <add>, %71, %cst_30 [1] : vector<2x8x32xf32> to vector<2x32xf32>
    %c0_31 = arith.constant 0 : index
    %c0_32 = arith.constant 0 : index
    %73 = vector.load %arg11[%c0_31, %c0_32] : memref<32x32xf32, #tpu.memory_space<vmem>>, vector<32x32xf32>
    %cst_33 = arith.constant dense<0.000000e+00> : vector<2x32xf32>
    %74 = tpu.matmul %72, %73, %cst_33 {dimension_numbers = #tpu.dot_dimension_numbers<[1], [0], [0], [1], [0, 0, 1, 1], [], []>} : vector<2x32xf32>, vector<32x32xf32>, vector<2x32xf32> -> vector<2x32xf32>
    %c0_34 = arith.constant 0 : index
    %c0_35 = arith.constant 0 : index
    %75 = vector.load %arg12[%c0_34, %c0_35] : memref<1x32xf32, #tpu.memory_space<vmem>>, vector<1x32xf32>
    %76 = vector.broadcast %75 : vector<1x32xf32> to vector<2x32xf32>
    %77 = arith.addf %74, %76 : vector<2x32xf32>
    %cst_36 = arith.constant 0.000000e+00 : f32
    %78 = vector.broadcast %cst_36 : f32 to vector<2x32xf32>
    %79 = arith.maximumf %77, %78 : vector<2x32xf32>
    %c0_37 = arith.constant 0 : index
    %c0_38 = arith.constant 0 : index
    %80 = vector.load %arg13[%c0_37, %c0_38] : memref<32x4xf32, #tpu.memory_space<vmem>>, vector<32x4xf32>
    %cst_39 = arith.constant dense<0.000000e+00> : vector<2x4xf32>
    %81 = tpu.matmul %79, %80, %cst_39 {dimension_numbers = #tpu.dot_dimension_numbers<[1], [0], [0], [1], [0, 0, 1, 1], [], []>} : vector<2x32xf32>, vector<32x4xf32>, vector<2x4xf32> -> vector<2x4xf32>
    %c0_40 = arith.constant 0 : index
    %c0_41 = arith.constant 0 : index
    %82 = vector.load %arg14[%c0_40, %c0_41] : memref<1x4xf32, #tpu.memory_space<vmem>>, vector<1x4xf32>
    %83 = vector.broadcast %82 : vector<1x4xf32> to vector<2x4xf32>
    %84 = arith.addf %81, %83 : vector<2x4xf32>
    %c0_42 = arith.constant 0 : index
    %c0_43 = arith.constant 0 : index
    %85 = vector.load %arg15[%c0_42, %c0_43] : memref<2x4xf32, #tpu.memory_space<vmem>>, vector<2x4xf32>
    tpu.vector_store %arg15[%c0_42, %c0_43], %84 {strides = array<i32>} : memref<2x4xf32, #tpu.memory_space<vmem>>, vector<2x4xf32>,
    return
  }
  func.func @transform_0(%arg0: i32) -> (i32, i32, i32) {
    %c0_i32 = arith.constant 0 : i32
    %c0_i32_0 = arith.constant 0 : i32
    %c0_i32_1 = arith.constant 0 : i32
    return %arg0, %c0_i32, %c0_i32_0 : i32, i32, i32
  }
  func.func @transform_1(%arg0: i32) -> (i32, i32) {
    %c0_i32 = arith.constant 0 : i32
    %c0_i32_0 = arith.constant 0 : i32
    return %arg0, %c0_i32 : i32, i32
  }
  func.func @transform_2(%arg0: i32) -> (i32, i32) {
    %c0_i32 = arith.constant 0 : i32
    %c0_i32_0 = arith.constant 0 : i32
    %c0_i32_1 = arith.constant 0 : i32
    return %c0_i32, %c0_i32_0 : i32, i32
  }
  func.func @transform_3(%arg0: i32) -> (i32, i32) {
    %c0_i32 = arith.constant 0 : i32
    %c0_i32_0 = arith.constant 0 : i32
    %c0_i32_1 = arith.constant 0 : i32
    return %c0_i32, %c0_i32_0 : i32, i32
  }
  func.func @transform_4(%arg0: i32) -> (i32, i32) {
    %c0_i32 = arith.constant 0 : i32
    %c0_i32_0 = arith.constant 0 : i32
    %c0_i32_1 = arith.constant 0 : i32
    return %c0_i32, %c0_i32_0 : i32, i32
  }
  func.func @transform_5(%arg0: i32) -> (i32, i32) {
    %c0_i32 = arith.constant 0 : i32
    %c0_i32_0 = arith.constant 0 : i32
    %c0_i32_1 = arith.constant 0 : i32
    return %c0_i32, %c0_i32_0 : i32, i32
  }
  func.func @transform_6(%arg0: i32) -> (i32, i32) {
    %c0_i32 = arith.constant 0 : i32
    %c0_i32_0 = arith.constant 0 : i32
    %c0_i32_1 = arith.constant 0 : i32
    return %c0_i32, %c0_i32_0 : i32, i32
  }
  func.func @transform_7(%arg0: i32) -> (i32, i32) {
    %c0_i32 = arith.constant 0 : i32
    %c0_i32_0 = arith.constant 0 : i32
    %c0_i32_1 = arith.constant 0 : i32
    return %c0_i32, %c0_i32_0 : i32, i32
  }
  func.func @transform_8(%arg0: i32) -> (i32, i32) {
    %c0_i32 = arith.constant 0 : i32
    %c0_i32_0 = arith.constant 0 : i32
    %c0_i32_1 = arith.constant 0 : i32
    return %c0_i32, %c0_i32_0 : i32, i32
  }
  func.func @transform_9(%arg0: i32) -> (i32, i32) {
    %c0_i32 = arith.constant 0 : i32
    %c0_i32_0 = arith.constant 0 : i32
    %c0_i32_1 = arith.constant 0 : i32
    return %c0_i32, %c0_i32_0 : i32, i32
  }
  func.func @transform_10(%arg0: i32) -> (i32, i32) {
    %c0_i32 = arith.constant 0 : i32
    %c0_i32_0 = arith.constant 0 : i32
    %c0_i32_1 = arith.constant 0 : i32
    return %c0_i32, %c0_i32_0 : i32, i32
  }
  func.func @transform_11(%arg0: i32) -> (i32, i32) {
    %c0_i32 = arith.constant 0 : i32
    %c0_i32_0 = arith.constant 0 : i32
    %c0_i32_1 = arith.constant 0 : i32
    return %c0_i32, %c0_i32_0 : i32, i32
  }
  func.func @transform_12(%arg0: i32) -> (i32, i32) {
    %c0_i32 = arith.constant 0 : i32
    %c0_i32_0 = arith.constant 0 : i32
    %c0_i32_1 = arith.constant 0 : i32
    return %c0_i32, %c0_i32_0 : i32, i32
  }
  func.func @transform_13(%arg0: i32) -> (i32, i32) {
    %c0_i32 = arith.constant 0 : i32
    %c0_i32_0 = arith.constant 0 : i32
    %c0_i32_1 = arith.constant 0 : i32
    return %c0_i32, %c0_i32_0 : i32, i32
  }
  func.func @transform_14(%arg0: i32) -> (i32, i32) {
    %c0_i32 = arith.constant 0 : i32
    %c0_i32_0 = arith.constant 0 : i32
    return %arg0, %c0_i32 : i32, i32
  }
}

</mosaic_0001>

<bundles_post_ra>
// kernel: tpu_custom_call.1
= control target key start
LH: loop header
LB: loop body
LE: loop exit
PB: predicated region body
PF: predicated region fallthrough
CT: control target
= control target key end

     0   :  { %s1509_s0 = inlined_call_operand.vmem [shape: f32[2,8,8], index: 0, kind: input, shape index: {}]   ;;  %s1510_s1 = inlined_call_operand.vmem [shape: f32[2,8], index: 1, kind: input, shape index: {}]   ;;  %s1511_s2 = inlined_call_operand.vmem [shape: f32[40,32], index: 2, kind: input, shape index: {}]   ;;  %s1512_s3 = inlined_call_operand.vmem [shape: f32[1,32], index: 3, kind: input, shape index: {}]   ;;  %s1513_s4 = inlined_call_operand.vmem [shape: f32[160,32], index: 4, kind: input, shape index: {}]   ;;  %s1514_s5 = inlined_call_operand.vmem [shape: f32[1,32], index: 5, kind: input, shape index: {}]   ;;  %s1515_s6 = inlined_call_operand.vmem [shape: f32[160,32], index: 6, kind: input, shape index: {}]   ;;  %s1516_s7 = inlined_call_operand.vmem [shape: f32[1,32], index: 7, kind: input, shape index: {}]   ;;  %s1517_s8 = inlined_call_operand.vmem [shape: f32[1,32], index: 8, kind: input, shape index: {}]   ;;  %s1518_s9 = inlined_call_operand.<no memory space> [shape: f32[1,1], index: 9, kind: input, shape index: {}]   ;;  %s1519_s10 = inlined_call_operand.vmem [shape: f32[32,32], index: 10, kind: input, shape index: {}]   ;;  %s1520_s11 = inlined_call_operand.vmem [shape: f32[1,32], index: 11, kind: input, shape index: {}]   ;;  %s1521_s12 = inlined_call_operand.vmem [shape: f32[32,4], index: 12, kind: input, shape index: {}]   ;;  %s1522_s13 = inlined_call_operand.vmem [shape: f32[1,4], index: 13, kind: input, shape index: {}]   ;;  %s1523_s14 = inlined_call_operand.hbm [shape: f32[2,4], index: 14, kind: output, shape index: {}]  }
   0x1   :  { %v19_v0 = vstv %s1518_s9 }
   0x2   :  { %20 = vst [vmem:[#allocation2] sm:$0x1] %v19_v0 }
   0x3   :  { %v50_v1 = vld [vmem:[%s1509_s0] sm:$0xff]  ;;  %vm64_vm0 = vcmask 1041408   ;;  %v51_v3 = vld [vmem:[%s1509_s0 + $0x8] sm:$0xff]  ;;  %vm86_vm1 = vcmask 1045504   ;;  %vm73_vm2 = vcmask 1046528  }
   0x4   :  { %v60_v2 = vrot.slane %v50_v1, 6  ;;  %v61_v4 = vrot.slane %v51_v3, 6  ;;  %v52_v5 = vld [vmem:[%s1511_s2] sm:$0xff]  ;;  %v53_v6 = vld [vmem:[%s1511_s2 + $0x8] sm:$0xff] }
   0x5   :  { %v972_v9 = vpack.c.bf16 %v53_v6, %v52_v5 }
   0x6   :  { %v65_v7 = vsel %vm64_vm0, 0.0, %v60_v2  ;;  %v67_v8 = vsel %vm64_vm0, %v60_v2, 0.0 }
   0x7   :  { %v87_v10 = vrot.slane %v65_v7, 2  ;;  %v88_v11 = vrot.slane %v67_v8, 2  ;;  %v74_v12 = vrot.slane %v65_v7, 1  ;;  %v75_v13 = vrot.slane %v67_v8, 1 }
   0x8   :  { %21 = vsyncpa [#allocation4], 0  ;;  %v66_v14 = vsel %vm64_vm0, 0.0, %v61_v4  ;;  %v68_v15 = vsel %vm64_vm0, %v61_v4, 0.0  ;;  %973 = vmatprep.subr.bf16.mxu0 %v972_v9  ;;  %s1097_s0 = smov 16   ;;  %s1098_s9 = smov 8  }
   0x9   :  { %v89_v16 = vsel %vm86_vm1, %v87_v10, %v88_v11  ;;  %v76_v17 = vsel %vm73_vm2, %v74_v12, %v75_v13  ;;  %v90_v18 = vrot.slane %v66_v14, 2  ;;  %v91_v19 = vrot.slane %v68_v15, 2  ;;  %975 = vmatpush3.bf16.msra.mxu0 %v972_v9  ;;  %v54_v24 = vld [vmem:[%s1511_s2 + $0x10] sm:$0xff]  ;;  %v55_v25 = vld [vmem:[%s1511_s2 + $0x18] sm:$0xff]  ;;  %v56_v33 = vld [vmem:[%s1511_s2 + $0x20] sm:$0xff]  ;;  %s1099_s29 = smov 24  }
   0xa   :  { %93 = vrot.lane.b32.xlu1 %v89_v16, %s1097_s0  ;;  %80 = vrot.lane.b32.xlu0 %v76_v17, %s1098_s9  ;;  %v77_v20 = vrot.slane %v66_v14, 1  ;;  %v78_v21 = vrot.slane %v68_v15, 1  ;;  %v100_v22 = vrot.slane %v65_v7, 3  ;;  %v101_v23 = vrot.slane %v67_v8, 3  ;;  %s1100_s30 = smov 32   ;;  %v227_v56 = vld [vmem:[%s1513_s4] sm:$0xff] }
   0xb   :  { %v92_v26 = vsel %vm86_vm1, %v90_v18, %v91_v19  ;;  %vm99_vm3 = vcmask 1044480   ;;  %v103_v27 = vrot.slane %v66_v14, 3  ;;  %v104_v28 = vrot.slane %v68_v15, 3  ;;  %v228_v57 = vld [vmem:[%s1513_s4 + $0x8] sm:$0xff]  ;;  %v229_v58 = vld [vmem:[%s1513_s4 + $0x10] sm:$0xff]  ;;  %v230_v61 = vld [vmem:[%s1513_s4 + $0x18] sm:$0xff] }
   0xc   :  { %v79_v29 = vsel %vm73_vm2, %v77_v20, %v78_v21  ;;  %v976_v30 = vpack.c.bf16 %v55_v25, %v54_v24  ;;  %v102_v31 = vsel %vm99_vm3, %v100_v22, %v101_v23  ;;  %v116_v32 = vrot.slane %v66_v14, 4  ;;  %v231_v63 = vld [vmem:[%s1513_s4 + $0x20] sm:$0xff]  ;;  %v232_v0 = vld [vmem:[%s1513_s4 + $0x28] sm:$0xff]  ;;  %v233_v2 = vld [vmem:[%s1513_s4 + $0x30] sm:$0xff]  ;;  %s1107_s23 = smov [#allocation3]  }
   0xd   :  { %v105_v34 = vsel %vm99_vm3, %v103_v27, %v104_v28  ;;  %v117_v35 = vrot.slane %v68_v15, 4  ;;  %v113_v36 = vrot.slane %v65_v7, 4  ;;  %v114_v37 = vrot.slane %v67_v8, 4  ;;  %v234_v3 = vld [vmem:[%s1513_s4 + $0x38] sm:$0xff]  ;;  %v235_v5 = vld [vmem:[%s1513_s4 + $0x40] sm:$0xff]  ;;  %v236_v6 = vld [vmem:[%s1513_s4 + $0x48] sm:$0xff] }
   0xe   :  { %95 = vrot.lane.b32.xlu1 %v92_v26, %s1097_s0  ;;  %82 = vrot.lane.b32.xlu0 %v79_v29, %s1098_s9  ;;  %vm112_vm4 = vcmask 1043456   ;;  %vm125_vm5 = vcmask 64512   ;;  %vm128_vm6 = vcmask 130048   ;;  %vm131_vm7 = vcmask 195584   ;;  %v237_v8 = vld [vmem:[%s1513_s4 + $0x50] sm:$0xff]  ;;  %v238_v9 = vld [vmem:[%s1513_s4 + $0x58] sm:$0xff] }
   0xf   :  { %977 = vmatprep.subr.bf16.mxu0 %v976_v30  ;;  %v118_v38 = vsel %vm112_vm4, %v116_v32, %v117_v35  ;;  %v115_v39 = vsel %vm112_vm4, %v113_v36, %v114_v37  ;;  %vm134_vm8 = vcmask 261120   ;;  %vm143_vm9 = vcmask 326656   ;;  %v239_v11 = vld [vmem:[%s1513_s4 + $0x60] sm:$0xff]  ;;  %v240_v12 = vld [vmem:[%s1513_s4 + $0x68] sm:$0xff]  ;;  %v242_v15 = vld [vmem:[%s1513_s4 + $0x78] sm:$0xff] }
  0x10   :  { %979 = vmatpush3.bf16.msra.mxu0 %v976_v30  ;;  %v1101_v59 = vmov 0.0|0.0   ;;  %v981_v60 = vpack.c.bf16 %v228_v57, %v227_v56  ;;  %v984_v62 = vpack.c.bf16 %v230_v61, %v229_v58  ;;  %v987_v1 = vpack.c.bf16 %v232_v0, %v231_v63  ;;  %v243_v17 = vld [vmem:[%s1513_s4 + $0x80] sm:$0xff]  ;;  %v244_v18 = vld [vmem:[%s1513_s4 + $0x88] sm:$0xff]  ;;  %v245_v22 = vld [vmem:[%s1513_s4 + $0x90] sm:$0xff] }
  0x11   :  { %945 = vmatprep.subr.mxu0 %v56_v33  ;;  %980 = vmatprep.subr.bf16.mxu1 %v1101_v59  ;;  %v990_v4 = vpack.c.bf16 %v234_v3, %v233_v2  ;;  %v996_v10 = vpack.c.bf16 %v238_v9, %v237_v8  ;;  %v999_v13 = vpack.c.bf16 %v240_v12, %v239_v11  ;;  %v905_v20 = vld [vmem:[%s1512_s3] ss:$0 sm:$0xff]  ;;  %v246_v23 = vld [vmem:[%s1513_s4 + $0x98] sm:$0xff]  ;;  %s1102_s3 = smov 64   ;;  %vm306_vm10 = vcmask 523264   ;;  %v401_v11 = vld [vmem:[%s1515_s6 + $0x10] sm:$0xff] }
  0x12   :  { %108 = vrot.lane.b32.xlu1 %v105_v34, %s1099_s29  ;;  %106 = vrot.lane.b32.xlu0 %v102_v31, %s1099_s29  ;;  %v1005_v19 = vpack.c.bf16 %v244_v18, %v243_v17  ;;  %v1008_v26 = vpack.c.bf16 %v246_v23, %v245_v22  ;;  %vm309_vm11 = vcmask 785408   ;;  %v399_v9 = vld [vmem:[%s1515_s6] sm:$0xff]  ;;  %v405_v18 = vld [vmem:[%s1515_s6 + $0x30] sm:$0xff]  ;;  %vm632_vm12 = vcmask 1041409  }
  0x13   :  { %982 = vmatpush1.bf16.msra.mxu1 %v981_v60  ;;  %v408_v22 = vld [vmem:[%s1515_s6 + $0x48] sm:$0xff]  ;;  %vm635_vm13 = vcmask 58368   ;;  %vm1105_vm14 = vmmov 0   ;;  %vm889_vm15 = vcmask 25600  }
  0x14   :  { %946 = vmatpush3.msra.mxu0 %v56_v33  ;;  %983 = vmatprep.subr.bf16.mxu1 %v1101_v59 }
  0x15   :  { %1010 = vmatprep.subr.bf16.mxu0 %v1101_v59 }
  0x16   :  { %121 = vrot.lane.b32.xlu1 %v118_v38, %s1100_s30  ;;  %119 = vrot.lane.b32.xlu0 %v115_v39, %s1100_s30 }
  0x17   :  { %985 = vmatpush1.bf16.msra.mxu1 %v984_v62 }
  0x18   :  { %986 = vmatprep.subr.bf16.mxu1 %v1101_v59 }
  0x1b   :  { %988 = vmatpush1.bf16.msra.mxu1 %v987_v1 }
  0x1c   :  { %989 = vmatprep.subr.bf16.mxu1 %v1101_v59 }
  0x1f   :  { %991 = vmatpush1.bf16.msra.mxu1 %v990_v4 }
  0x20   :  { %992 = vmatprep.subr.bf16.mxu1 %v1101_v59 }
  0x7c   :  { %v94_v40 = vpop.permute.xlu1 %93  ;;  %v81_v41 = vpop.permute.xlu0 %80 }
  0x7d   :  { %v126_v44 = vsel %vm125_vm5, %v65_v7, %v81_v41  ;;  %v993_v7 = vpack.c.bf16 %v236_v6, %v235_v5 }
  0x7e   :  { %v129_v49 = vsel %vm128_vm6, %v126_v44, %v94_v40 }
  0x7f   :  { %994 = vmatpush1.bf16.msra.mxu1 %v993_v7 }
  0x80   :  { %v96_v42 = vpop.permute.xlu1 %95  ;;  %v83_v43 = vpop.permute.xlu0 %82  ;;  %995 = vmatprep.subr.bf16.mxu1 %v1101_v59 }
  0x81   :  { %v127_v45 = vsel %vm125_vm5, %v66_v14, %v83_v43  ;;  %v241_v14 = vld [vmem:[%s1513_s4 + $0x70] sm:$0xff]  ;;  %s1103_s4 = smov 96  }
  0x82   :  { %v130_v48 = vsel %vm128_vm6, %v127_v45, %v96_v42  ;;  %v1002_v16 = vpack.c.bf16 %v242_v15, %v241_v14  ;;  %v403_v15 = vld [vmem:[%s1515_s6 + $0x20] sm:$0xff] }
  0x83   :  { %997 = vmatpush1.bf16.msra.mxu1 %v996_v10  ;;  %v400_v10 = vld [vmem:[%s1515_s6 + $0x8] sm:$0xff] }
  0x84   :  { %v109_v46 = vpop.permute.xlu1 %108  ;;  %v107_v47 = vpop.permute.xlu0 %106  ;;  %998 = vmatprep.subr.bf16.mxu1 %v1101_v59  ;;  %v1011_v12 = vpack.c.bf16 %v400_v10, %v399_v9 }
  0x85   :  { %v133_v50 = vsel %vm131_vm7, %v130_v48, %v109_v46  ;;  %v132_v51 = vsel %vm131_vm7, %v129_v49, %v107_v47 }
  0x87   :  { %1000 = vmatpush1.bf16.msra.mxu1 %v999_v13  ;;  %v402_v13 = vld [vmem:[%s1515_s6 + $0x18] sm:$0xff] }
  0x88   :  { %v122_v52 = vpop.permute.xlu1 %121  ;;  %v120_v53 = vpop.permute.xlu0 %119  ;;  %1001 = vmatprep.subr.bf16.mxu1 %v1101_v59  ;;  %v1014_v14 = vpack.c.bf16 %v402_v13, %v401_v11  ;;  %v594_v13 = vld [vmem:[%s1510_s1] sm:$0x3] }
  0x89   :  { %v136_v54 = vsel %vm134_vm8, %v133_v50, %v122_v52  ;;  %v135_v55 = vsel %vm134_vm8, %v132_v51, %v120_v53 }
  0x8a   :  { %947 = vmatprep.mubr.msk.f32.mxu0 %vm143_vm9, %v135_v55 }
  0x8b   :  { %948 = vmatmul.mubr.msk.f32.vlgmr.msra.gmra.mrb[0].mxu0 %vm143_vm9, %v136_v54  ;;  %1003 = vmatpush1.bf16.msra.mxu1 %v1002_v16  ;;  %v404_v16 = vld [vmem:[%s1515_s6 + $0x28] sm:$0xff] }
  0x8c   :  { %1004 = vmatprep.subr.bf16.mxu1 %v1101_v59  ;;  %1012 = vmatpush1.bf16.msra.mxu0 %v1011_v12  ;;  %v1017_v17 = vpack.c.bf16 %v404_v16, %v403_v15 }
  0x8d   :  { %1013 = vmatprep.subr.bf16.mxu0 %v1101_v59 }
  0x8f   :  { %1006 = vmatpush1.bf16.msra.mxu1 %v1005_v19  ;;  %v406_v19 = vld [vmem:[%s1515_s6 + $0x38] sm:$0xff] }
  0x90   :  { %1007 = vmatprep.subr.bf16.mxu1 %v1101_v59  ;;  %1015 = vmatpush1.bf16.msra.mxu0 %v1014_v14 }
  0x91   :  { %1016 = vmatprep.subr.bf16.mxu0 %v1101_v59 }
  0x93   :  { %1009 = vmatpush1.bf16.msra.mxu1 %v1008_v26 }
  0x94   :  { %1040 = vmatprep.subr.bf16.mxu1 %v1101_v59  ;;  %1018 = vmatpush1.bf16.msra.mxu0 %v1017_v17 }
  0x95   :  { %1019 = vmatprep.subr.bf16.mxu0 %v1101_v59 }
 0x15e   :  { %v949_v21 = vpop.f32.mrb[0].mxu0 }
 0x15f   :  { %v222_v24 = vadd.f32 %v949_v21, %v905_v20  ;;  %v216_v25 = vpop.f32.mrb[1].mxu0  ;;  %v407_v21 = vld [vmem:[%s1515_s6 + $0x40] sm:$0xff] }
 0x160   :  { %v217_v27 = vadd.f32 %v905_v20, %v216_v25  ;;  %v1020_v20 = vpack.c.bf16 %v406_v19, %v405_v18  ;;  %v1023_v23 = vpack.c.bf16 %v408_v22, %v407_v21  ;;  %v410_v25 = vld [vmem:[%s1515_s6 + $0x58] sm:$0xff] }
 0x161   :  { %v226_v28 = vmax.f32 %v222_v24, 0.0  ;;  %v409_v24 = vld [vmem:[%s1515_s6 + $0x50] sm:$0xff] }
 0x162   :  { %v225_v29 = vmax.f32 %v217_v27, 0.0  ;;  %1021 = vmatpush1.bf16.msra.mxu0 %v1020_v20  ;;  %v1026_v26 = vpack.c.bf16 %v410_v25, %v409_v24  ;;  %v411_v27 = vld [vmem:[%s1515_s6 + $0x60] sm:$0xff] }
 0x163   :  { %v251_v30 = vrot.slane %v226_v28, 6  ;;  %1022 = vmatprep.subr.bf16.mxu0 %v1101_v59  ;;  %v412_v28 = vld [vmem:[%s1515_s6 + $0x68] sm:$0xff] }
 0x164   :  { %v250_v31 = vrot.slane %v225_v29, 6  ;;  %v1029_v29 = vpack.c.bf16 %v412_v28, %v411_v27 }
 0x165   :  { %v255_v32 = vsel %vm64_vm0, 0.0, %v251_v30  ;;  %v257_v33 = vsel %vm64_vm0, %v251_v30, 0.0  ;;  %v413_v30 = vld [vmem:[%s1515_s6 + $0x70] sm:$0xff] }
 0x166   :  { %v254_v34 = vsel %vm64_vm0, 0.0, %v250_v31  ;;  %v256_v35 = vsel %vm64_vm0, %v250_v31, 0.0  ;;  %v265_v44 = vrot.slane %v255_v32, 1  ;;  %v266_v45 = vrot.slane %v257_v33, 1  ;;  %1024 = vmatpush1.bf16.msra.mxu0 %v1023_v23  ;;  %v414_v31 = vld [vmem:[%s1515_s6 + $0x78] sm:$0xff] }
 0x167   :  { %v298_v36 = vrot.slane %v254_v34, 4  ;;  %v299_v37 = vrot.slane %v256_v35, 4  ;;  %v274_v38 = vrot.slane %v254_v34, 2  ;;  %v275_v39 = vrot.slane %v256_v35, 2  ;;  %1025 = vmatprep.subr.bf16.mxu0 %v1101_v59 }
 0x168   :  { %v262_v40 = vrot.slane %v254_v34, 1  ;;  %v263_v41 = vrot.slane %v256_v35, 1  ;;  %v286_v47 = vrot.slane %v254_v34, 3  ;;  %v287_v48 = vrot.slane %v256_v35, 3 }
 0x169   :  { %v300_v42 = vsel %vm112_vm4, %v298_v36, %v299_v37  ;;  %v276_v43 = vsel %vm86_vm1, %v274_v38, %v275_v39  ;;  %v267_v49 = vsel %vm73_vm2, %v265_v44, %v266_v45  ;;  %v289_v50 = vrot.slane %v255_v32, 3  ;;  %v908_v36 = vld [vmem:[%s1514_s5] ss:$0 sm:$0xff]  ;;  %v417_v37 = vld [vmem:[%s1515_s6 + $0x90] sm:$0xff]  ;;  %v418_v38 = vld [vmem:[%s1515_s6 + $0x98] sm:$0xff]  ;;  %s897_s5 = sshll.u32 %s1107_s23, 4  ;;  %s898_s5 = int_to_ptr.vmem [resolvable:$true] %s897_s5 }
 0x16a   :  { %909 = vmatprep.mubr.msk.f32.mxu1 %vm134_vm8, %v300_v42  ;;  %280 = vrot.lane.b32.xlu1 %v276_v43, %s1102_s3  ;;  %v264_v46 = vsel %vm73_vm2, %v262_v40, %v263_v41  ;;  %v290_v51 = vrot.slane %v257_v33, 3  ;;  %v288_v52 = vsel %vm99_vm3, %v286_v47, %v287_v48  ;;  %v277_v53 = vrot.slane %v255_v32, 2  ;;  %p1078_p1 = scmp.lt.s32.totalorder %s898_s5, %s898_s5 }
 0x16b   :  { %268 = vrot.lane.b32.xlu0 %v264_v46, %s1100_s30  ;;  %v278_v54 = vrot.slane %v257_v33, 2  ;;  %v302_v61 = vrot.slane %v257_v33, 4  ;;  %v301_v62 = vrot.slane %v255_v32, 4  ;;  %1027 = vmatpush1.bf16.msra.mxu0 %v1026_v26  ;;  %v415_v33 = vld [vmem:[%s1515_s6 + $0x80] sm:$0xff]  ;;  %v1038_v40 = vpack.c.bf16 %v418_v38, %v417_v37 }
 0x16c   :  { %v291_v55 = vsel %vm99_vm3, %v289_v50, %v290_v51  ;;  %1028 = vmatprep.subr.bf16.mxu0 %v1101_v59 }
 0x16d   :  { %v279_v56 = vsel %vm86_vm1, %v277_v53, %v278_v54  ;;  %v303_v3 = vsel %vm112_vm4, %v301_v62, %v302_v61  ;;  %v596_v62 = vlaneseq }
 0x16e   :  { %270 = vrot.lane.b32.xlu1 %v267_v49, %s1100_s30 }
 0x16f   :  { %292 = vrot.lane.b32.xlu0 %v288_v52, %s1103_s4  ;;  %1030 = vmatpush1.bf16.msra.mxu0 %v1029_v29 }
 0x170   :  { %1031 = vmatprep.subr.bf16.mxu0 %v1101_v59 }
 0x172   :  { %294 = vrot.lane.b32.xlu1 %v291_v55, %s1103_s4 }
 0x173   :  { %282 = vrot.lane.b32.xlu0 %v279_v56, %s1102_s3 }
 0x1dc   :  { %v281_v57 = vpop.permute.xlu1 %280 }
 0x1dd   :  { %v269_v58 = vpop.permute.xlu0 %268 }
 0x1de   :  { %v304_v60 = vsel %vm134_vm8, %v254_v34, %v269_v58  ;;  %v416_v34 = vld [vmem:[%s1515_s6 + $0x88] sm:$0xff] }
 0x1df   :  { %v307_v1 = vsel %vm306_vm10, %v304_v60, %v281_v57  ;;  %v1035_v35 = vpack.c.bf16 %v416_v34, %v415_v33  ;;  %v911_v33 = vld [vmem:[%s1516_s7] ss:$0 sm:$0xff] }
 0x1e0   :  { %v271_v63 = vpop.permute.xlu1 %270 }
 0x1e1   :  { %v293_v0 = vpop.permute.xlu0 %292  ;;  %v305_v5 = vsel %vm134_vm8, %v255_v32, %v271_v63  ;;  %v1032_v32 = vpack.c.bf16 %v414_v31, %v413_v30 }
 0x1e2   :  { %v310_v2 = vsel %vm309_vm11, %v307_v1, %v293_v0 }
 0x1e3   :  { %387 = vmatmul.mubr.f32.vlgmr.msra.gmra.mrb[0].mxu1 %v310_v2  ;;  %1033 = vmatpush1.bf16.msra.mxu0 %v1032_v32  ;;  %v1104_v32 = vmov 0  }
 0x1e4   :  { %910 = vmatprep.mubr.msk.f32.mxu1 %vm134_vm8, %v303_v3  ;;  %v295_v4 = vpop.permute.xlu1 %294  ;;  %1034 = vmatprep.subr.bf16.mxu0 %v1101_v59  ;;  %v1407_v3 = vshrl.u32 %v596_v62, 7 }
 0x1e5   :  { %v283_v6 = vpop.permute.xlu0 %282  ;;  %1063 = vset.pattern.permute.xlu0 %v1104_v32  ;;  %1064 = vset.pattern.permute.xlu1 %v1104_v32 }
 0x1e6   :  { %v308_v7 = vsel %vm306_vm10, %v305_v5, %v283_v6  ;;  %v1414_v12 = vsub.s32 0, %v1407_v3 }
 0x1e7   :  { %v311_v8 = vsel %vm309_vm11, %v308_v7, %v295_v4  ;;  %1036 = vmatpush1.bf16.msra.mxu0 %v1035_v35  ;;  %v914_v35 = vld [vmem:[%s1517_s8] ss:$0 sm:$0xff] }
 0x1e8   :  { %392 = vmatmul.mubr.f32.gmra.mrb[2].mxu1 %v311_v8  ;;  %1037 = vmatprep.subr.bf16.mxu0 %v1101_v59  ;;  %v599_v16 = vrot.slane %v594_v13, %v1414_v12 }
 0x1eb   :  { %1039 = vmatpush1.bf16.msra.mxu0 %v1038_v40 }
 0x2b6   :  { %v388_v39 = vpop.f32.mrb[0].mxu1 }
 0x2b7   :  { %v389_v41 = vadd.f32 %v908_v36, %v388_v39  ;;  %v390_v42 = vpop.f32.mrb[1].mxu1 }
 0x2b9   :  { %v397_v43 = vmax.f32 %v389_v41, 0.0 }
 0x2bb   :  { %v422_v44 = vrot.slane %v397_v43, 6  ;;  %v393_v45 = vpop.f32.mrb[2].mxu1 }
 0x2bc   :  { %v394_v46 = vadd.f32 %v908_v36, %v393_v45  ;;  %v395_v47 = vpop.f32.mrb[3].mxu1  ;;  %v605_v45 = vsub.s32 1, %v1407_v3 }
 0x2bd   :  { %v426_v48 = vsel %vm64_vm0, 0.0, %v422_v44  ;;  %v428_v49 = vsel %vm64_vm0, %v422_v44, 0.0  ;;  %v915_v47 = vld [vmem:[#allocation2] ss:$0 sm:$0xff] }
 0x2be   :  { %v471_v50 = vrot.slane %v428_v49, 4  ;;  %v398_v51 = vmax.f32 %v394_v46, 0.0  ;;  %v470_v52 = vrot.slane %v426_v48, 4  ;;  %v446_v53 = vrot.slane %v426_v48, 2 }
 0x2bf   :  { %v447_v54 = vrot.slane %v428_v49, 2  ;;  %v434_v55 = vrot.slane %v426_v48, 1  ;;  %v435_v56 = vrot.slane %v428_v49, 1  ;;  %v458_v57 = vrot.slane %v426_v48, 3 }
 0x2c0   :  { %v423_v58 = vrot.slane %v398_v51, 6  ;;  %v472_v60 = vsel %vm112_vm4, %v470_v52, %v471_v50  ;;  %v459_v61 = vrot.slane %v428_v49, 3  ;;  %v606_v46 = vrot.slane %v594_v13, %v605_v45 }
 0x2c1   :  { %912 = vmatprep.mubr.msk.f32.mxu0 %vm134_vm8, %v472_v60  ;;  %v448_v63 = vsel %vm86_vm1, %v446_v53, %v447_v54  ;;  %v436_v0 = vsel %vm73_vm2, %v434_v55, %v435_v56 }
 0x2c2   :  { %v427_v1 = vsel %vm64_vm0, 0.0, %v423_v58  ;;  %v429_v2 = vsel %vm64_vm0, %v423_v58, 0.0  ;;  %452 = vrot.lane.b32.xlu1 %v448_v63, %s1102_s3  ;;  %440 = vrot.lane.b32.xlu0 %v436_v0, %s1100_s30  ;;  %v460_v6 = vsel %vm99_vm3, %v458_v57, %v459_v61  ;;  %v623_v57 = vand.u32 127, %v596_v62 }
 0x2c3   :  { %v437_v4 = vrot.slane %v427_v1, 1  ;;  %v438_v5 = vrot.slane %v429_v2, 1  ;;  %v449_v7 = vrot.slane %v427_v1, 2  ;;  %v450_v9 = vrot.slane %v429_v2, 2 }
 0x2c4   :  { %v461_v10 = vrot.slane %v427_v1, 3  ;;  %v462_v11 = vrot.slane %v429_v2, 3  ;;  %v474_v20 = vrot.slane %v429_v2, 4  ;;  %v473_v21 = vrot.slane %v427_v1, 4 }
 0x2c5   :  { %v439_v8 = vsel %vm73_vm2, %v437_v4, %v438_v5  ;;  %v451_v14 = vsel %vm86_vm1, %v449_v7, %v450_v9  ;;  %v626_v60 = vsub.s32 %v623_v57, %v1407_v3 }
 0x2c6   :  { %464 = vrot.lane.b32.xlu0 %v460_v6, %s1103_s4  ;;  %442 = vrot.lane.b32.xlu1 %v439_v8, %s1100_s30  ;;  %v463_v15 = vsel %vm99_vm3, %v461_v10, %v462_v11  ;;  %v475_v26 = vsel %vm112_vm4, %v473_v21, %v474_v20 }
 0x2ca   :  { %454 = vrot.lane.b32.xlu0 %v451_v14, %s1102_s3  ;;  %466 = vrot.lane.b32.xlu1 %v463_v15, %s1103_s4 }
 0x2ce   :  { %601 = vbcast.lane.b32.xlu1 %v599_v16, 256 }
 0x334   :  { %v453_v17 = vpop.permute.xlu1 %452  ;;  %v441_v18 = vpop.permute.xlu0 %440 }
 0x335   :  { %v476_v19 = vsel %vm134_vm8, %v426_v48, %v441_v18 }
 0x336   :  { %v478_v22 = vsel %vm306_vm10, %v476_v19, %v453_v17 }
 0x338   :  { %v465_v23 = vpop.permute.xlu0 %464  ;;  %v443_v24 = vpop.permute.xlu1 %442 }
 0x339   :  { %v480_v25 = vsel %vm309_vm11, %v478_v22, %v465_v23  ;;  %v477_v27 = vsel %vm134_vm8, %v427_v1, %v443_v24 }
 0x33a   :  { %557 = vmatmul.mubr.f32.vlgmr.msra.gmra.mrb[2].mxu0 %v480_v25  ;;  %v718_v25 = vld [vmem:[%s1519_s10] sm:$0xff] }
 0x33b   :  { %913 = vmatprep.mubr.msk.f32.mxu0 %vm134_vm8, %v475_v26  ;;  %v719_v26 = vld [vmem:[%s1519_s10 + $0x8] sm:$0xff] }
 0x33c   :  { %v455_v28 = vpop.permute.xlu0 %454  ;;  %v467_v29 = vpop.permute.xlu1 %466 }
 0x33d   :  { %v479_v30 = vsel %vm306_vm10, %v477_v27, %v455_v28  ;;  %v1041_v27 = vpack.c.bf16 %v719_v26, %v718_v25  ;;  %v721_v28 = vld [vmem:[%s1519_s10 + $0x18] sm:$0xff] }
 0x33e   :  { %v481_v31 = vsel %vm309_vm11, %v479_v30, %v467_v29  ;;  %v1106_v30 = vmov 0.0  }
 0x33f   :  { %562 = vmatmul.mubr.f32.gmra.mrb[4].mxu0 %v481_v31  ;;  %1042 = vmatpush3.bf16.msra.mxu1 %v1041_v27 }
 0x340   :  { %v602_v48 = vpop.permute.xlu1 %601  ;;  %1043 = vmatprep.subr.bf16.mxu1 %v1101_v59  ;;  %958 = vmatprep.mubr.msk.f32.mxu1 %vm1105_vm14, %v1106_v30 }
 0x40d   :  { %v558_v34 = vpop.f32.mrb[2].mxu0 }
 0x40e   :  { %v1438_v36 = vadd.f32 %v911_v33, %v558_v34  ;;  %v560_v37 = vpop.f32.mrb[3].mxu0 }
 0x410   :  { %v574_v38 = vmul.f32 %v914_v35, %v1438_v36 }
 0x412   :  { %v563_v39 = vpop.f32.mrb[4].mxu0  ;;  %v576_v40 = vsel %vm134_vm8, %v574_v38, 0.0 }
 0x413   :  { %v1442_v41 = vadd.f32 %v911_v33, %v563_v39  ;;  %577 = vadd.xlane.f32.xlu0 %v576_v40  ;;  %v565_v42 = vpop.f32.mrb[5].mxu0 }
 0x415   :  { %v575_v43 = vmul.f32 %v914_v35, %v1442_v41 }
 0x417   :  { %v579_v44 = vsel %vm134_vm8, %v575_v43, 0.0 }
 0x418   :  { %580 = vadd.xlane.f32.xlu1 %v579_v44 }
 0x429   :  { %589 = vperm.xlu0 %1063, %v915_v47   ;;  %608 = vbcast.lane.b32.xlu1 %v606_v46, 256 }
 0x4a0   :  { %v578_v49 = vpop.xlane.xlu0 %577 }
 0x4a5   :  { %v581_v50 = vpop.xlane.xlu1 %580 }
 0x4a8   :  { %v590_v51 = vpop.permute.xlu0 %589 }
 0x4a9   :  { %v592_v52 = vadd.f32 %v590_v51, %v578_v49  ;;  %v593_v53 = vadd.f32 %v590_v51, %v581_v50  ;;  %v609_v55 = vpop.permute.xlu1 %608 }
 0x4ab   :  { %v612_v54 = vadd.f32 %v602_v48, %v592_v52  ;;  %v613_v56 = vadd.f32 %v609_v55, %v593_v53  ;;  %v805_v48 = vld [vmem:[%s1521_s12] sm:$0xff]  ;;  %v807_v53 = vld [vmem:[%s1521_s12 + $0x10] sm:$0xff] }
 0x4ad   :  { %617 = vperm.xlu1 %1064, %v612_v54  }
 0x4b1   :  { %620 = vperm.xlu1 %1064, %v613_v56  }
 0x52c   :  { %v618_v58 = vpop.permute.xlu1 %617 }
 0x52d   :  { %v627_v63 = vrot.slane %v618_v58, %v626_v60 }
 0x530   :  { %v621_v61 = vpop.permute.xlu1 %620 }
 0x531   :  { %v631_v0 = vrot.slane %v621_v61, %v626_v60 }
 0x533   :  { %v633_v1 = vsel %vm632_vm12, %v631_v0, %v627_v63 }
 0x534   :  { %v636_v2 = vsel %vm635_vm13, %v633_v1, -inf }
 0x535   :  { %637 = vmax.xlane.f32.xlu1 %v636_v2 }
 0x5c2   :  { %v638_v4 = vpop.xlane.xlu1 %637 }
 0x5c3   :  { %v643_v5 = vrot.slane %v638_v4, %v1414_v12  ;;  %v647_v6 = vrot.slane %v638_v4, %v605_v45 }
 0x5c5   :  { %v650_v7 = vsub.f32 %v612_v54, %v643_v5  ;;  %v651_v8 = vsub.f32 %v613_v56, %v647_v6  ;;  %v808_v54 = vld [vmem:[%s1521_s12 + $0x18] sm:$0xff]  ;;  %v916_v56 = vld [vmem:[%s1520_s11] ss:$0 sm:$0xff] }
 0x5c6   :  { %v1050_v55 = vpack.c.bf16 %v808_v54, %v807_v53 }
 0x5c7   :  { %v652_v62 = vmul.f32 1.442695, %v650_v7  ;;  %v654_v9 = vmul.f32 1.442695, %v651_v8 }
 0x5c9   :  { %1065 = vpow2.f32 %v652_v62 }
 0x5ca   :  { %1067 = vpow2.f32 %v654_v9 }
 0x5d3   :  { %v1066_v3 = vpop.eup %1065 }
 0x5d4   :  { %659 = vperm.xlu0 %1063, %v1066_v3   ;;  %v1068_v10 = vpop.eup %1067 }
 0x5d8   :  { %662 = vperm.xlu0 %1063, %v1068_v10  }
 0x653   :  { %v660_v11 = vpop.permute.xlu0 %659 }
 0x654   :  { %v667_v14 = vrot.slane %v660_v11, %v626_v60 }
 0x657   :  { %v663_v13 = vpop.permute.xlu0 %662 }
 0x658   :  { %v671_v15 = vrot.slane %v663_v13, %v626_v60 }
 0x65a   :  { %v672_v16 = vsel %vm632_vm12, %v671_v15, %v667_v14 }
 0x65b   :  { %v674_v17 = vsel %vm635_vm13, %v672_v16, 0.0 }
 0x65c   :  { %675 = vadd.xlane.f32.xlu0 %v674_v17 }
 0x6e9   :  { %v676_v18 = vpop.xlane.xlu0 %675 }
 0x6ea   :  { %v681_v19 = vrot.slane %v676_v18, %v1414_v12  ;;  %v685_v20 = vrot.slane %v676_v18, %v605_v45  ;;  %v720_v12 = vld [vmem:[%s1519_s10 + $0x10] sm:$0xff] }
 0x6eb   :  { %v1044_v29 = vpack.c.bf16 %v721_v28, %v720_v12 }
 0x6ec   :  { %1069 = vrcp.f32 %v681_v19 }
 0x6ed   :  { %1071 = vrcp.f32 %v685_v20  ;;  %1045 = vmatpush3.bf16.msra.mxu1 %v1044_v29 }
 0x6ee   :  { %1046 = vmatprep.subr.bf16.mxu1 %v1101_v59 }
 0x6f6   :  { %v1070_v21 = vpop.eup %1069 }
 0x6f7   :  { %v1072_v22 = vpop.eup %1071  ;;  %v689_v23 = vmul.f32 %v1070_v21, %v1066_v3 }
 0x6f8   :  { %v691_v24 = vmul.f32 %v1072_v22, %v1068_v10 }
 0x6f9   :  { %694 = vperm.xlu1 %1064, %v689_v23  }
 0x6fa   :  { %699 = vperm.xlu0 %1063, %v691_v24  }
 0x778   :  { %v695_v31 = vpop.permute.xlu1 %694 }
 0x779   :  { %v700_v32 = vpop.permute.xlu0 %699  ;;  %v702_v33 = vmul.f32 %v695_v31, %v1438_v36  ;;  %v806_v36 = vld [vmem:[%s1521_s12 + $0x8] sm:$0xff]  ;;  %s1073_s12 = scalar_lea.vmem %s898_s5, 32 }
 0x77a   :  { %v703_v34 = vmul.f32 %v700_v32, %v1442_v41  ;;  %v1047_v51 = vpack.c.bf16 %v806_v36, %v805_v48  ;;  %p1074_p0 = scmp.ne.s32.totalorder %s898_s5, %s1073_s12  ;;  %p1079_p2 = scmp.lt.s32.totalorder %s1073_s12, %s1073_s12 }
 0x77b   :  { %v704_v35 = vsel %vm134_vm8, %v702_v33, 0.0 }
 0x77c   :  { %v711_v37 = vsel %vm134_vm8, %v703_v34, 0.0  ;;  %v705_v38 = vrot.slane %v704_v35, 4  ;;  %p1080_p3 = por %p1079_p2, %p1078_p1 }
 0x77d   :  { %v712_v39 = vrot.slane %v711_v37, 4 }
 0x77e   :  { %v706_v40 = vadd.f32 %v705_v38, %v704_v35  ;;  %p1081_p4 = pnand %p1080_p3, %p1074_p0 }
 0x77f   :  { %v713_v42 = vadd.f32 %v712_v39, %v711_v37 }
 0x780   :  { %v707_v43 = vrot.slane %v706_v40, 2 }
 0x781   :  { %v714_v44 = vrot.slane %v713_v42, 2 }
 0x782   :  { %v708_v45 = vadd.f32 %v707_v43, %v706_v40 }
 0x783   :  { %v715_v46 = vadd.f32 %v714_v44, %v713_v42 }
 0x784   :  { %v709_v47 = vrot.slane %v708_v45, 1 }
 0x785   :  { %v716_v41 = vrot.slane %v715_v46, 1 }
 0x786   :  { %v710_v49 = vadd.f32 %v709_v47, %v708_v45 }
 0x787   :  { %v717_v50 = vadd.f32 %v716_v41, %v715_v46 }
 0x789   :  { %v731_v52 = vsel %vm632_vm12, %v717_v50, %v710_v49 }
 0x78a   :  { %959 = vmatmul.mubr.msk.f32.vlgmr.msra.gmra.mrb[4].mxu1 %vm134_vm8, %v731_v52 }
 0x78b   :  { %1048 = vmatpush3.bf16.msra.mxu1 %v1047_v51  ;;  %969 = vmatprep.mubr.msk.f32.mxu1 %vm1105_vm14, %v1106_v30 }
 0x78c   :  { %1049 = vmatprep.subr.bf16.mxu1 %v1101_v59  ;;  %v918_v59 = vld [vmem:[%s1522_s13] ss:$0 sm:$0xff] }
 0x78f   :  { %1051 = vmatpush3.bf16.msra.mxu1 %v1050_v55 }
 0x85d   :  { %v800_v57 = vpop.f32.mrb[4].mxu1 }
 0x85e   :  { %v801_v58 = vadd.f32 %v916_v56, %v800_v57  ;;  %v960_v60 = vpop.f32.mrb[5].mxu1 }
 0x860   :  { %v804_v61 = vmax.f32 %v801_v58, 0.0 }
 0x862   :  { %970 = vmatmul.mubr.msk.f32.vlgmr.msra.gmra.mrb[6].mxu1 %vm134_vm8, %v804_v61 }
 0x935   :  { %v885_v63 = vpop.f32.mrb[6].mxu1 }
 0x936   :  { %v886_v0 = vadd.f32 %v918_v59, %v885_v63  ;;  %v971_v1 = vpop.f32.mrb[7].mxu1 }
 0x938   :  { %890 = vst.msk [vmem:[#allocation3] sm:$0x3] %vm889_vm15, %v886_v0 }
 0x939   :  { %1084 = shalt.err (!%p1081_p4)
}
 0x93a   :  { %s1085_s1 = scalar_lea.hbm %s1523_s14, 32 }
 0x93b   :  { %p1086_p5 = scmp.ne.s32.totalorder %s1523_s14, %s1085_s1  ;;  %p1089_p6 = scmp.lt.u32.totalorder %s1085_s1, %s1523_s14 }
 0x93d   :  { %p1091_p7 = pnand %p1089_p6, %p1086_p5 }
 0x93f   :  { %1094 = shalt.err (!%p1091_p7)
}
 0x940   :  { %900 = dma.vmem_to_hbm [thread:$0]  %s898_s5, 32, %s1523_s14, [#allocation4]  }
 0x941   :  { %1095 = dma.done.wait [#allocation4], 32  }
 0x942   :  { %1096 = vsyncadd [#allocation4], 4294967264 }
 0x943   :  { %904 = vsyncpa [#allocation4], 1 }

</bundles_post_ra>
